<compile_context>
chip_gen: v7x
topology: tpu7x:2x2x1
jax: 0.10.0
libtpu: 0.0.40
codegen_flags: <defaults>
</compile_context>

<pallas_src>
import functools

import jax
import jax.numpy as jnp
from jax.experimental import pallas as pl
from jax.experimental.pallas import tpu as pltpu


# ----------------------------- Pallas kernel --------------------------------

def _q_heads_kernel(s_ref, a_ref, w1s_ref, w1a_ref, b1_ref, w2_ref, b2_ref,
                    w3_ref, b3_ref, out_ref, *, hidden_dim, num_heads,
                    block_diag_w2):
    """Fused multi-head Q MLP on one batch tile.

    Heads are packed along the lane dimension (width = num_heads * hidden_dim):
      h1 = relu(state @ W1s + action @ W1a + b1)          (tile, width)
      h2 = relu(h1 @ W2 + b2)                             (tile, width)
      q  = h2 @ W3_block + b3                             (tile, num_heads)
    W2 is block-diagonal (one fused dot) while width <= 128, otherwise the
    heads use separate (H, H) dots.  W3 is a (width, num_heads) block matrix
    so the last layer is one matmul + one unmasked full-block store.
    """
    h1 = jnp.maximum(
        jnp.dot(s_ref[...], w1s_ref[...], preferred_element_type=jnp.float32)
        + jnp.dot(a_ref[...], w1a_ref[...], preferred_element_type=jnp.float32)
        + b1_ref[...],
        0.0)

    if block_diag_w2:
        z2 = jnp.dot(h1, w2_ref[...], preferred_element_type=jnp.float32)
    else:
        # Fallback for wide heads (width > 128): per-head (H, H) dots instead
        # of a block-diagonal matmul full of zeros.
        H = hidden_dim
        parts = [
            jnp.dot(h1[:, h * H:(h + 1) * H], w2_ref[h * H:(h + 1) * H, :],
                    preferred_element_type=jnp.float32)
            for h in range(num_heads)
        ]
        z2 = jnp.concatenate(parts, axis=-1)

    h2 = jnp.maximum(z2 + b2_ref[...], 0.0)

    # All heads at once: (tile, width) @ (width, num_heads) + (1, num_heads).
    out_ref[...] = (
        jnp.dot(h2, w3_ref[...], preferred_element_type=jnp.float32)
        + b3_ref[...]
    ).astype(out_ref.dtype)


def _round_up(x, m):
    return ((x + m - 1) // m) * m


def _choose_batch_tile(batch):
    """Big tiles to amortize ~0.35us/step pipeline overhead; on large batches
    keep >= 4 grid steps so v7x's two TensorCores both get work on the
    'parallel' axis (harmless on single-TC v5e/v6e)."""
    if batch <= 512:
        return max(8, _round_up(batch, 8))      # whole batch in one grid step
    tile = _round_up(pl.cdiv(batch, 4), 8)
    return int(min(2048, max(512, tile)))


def fused_q_forward(state, action, W1s, W1a, B1, W2, B2, W3, B3):
    """Run all packed Q heads in one Pallas kernel.

    state:(B, ni) f32, action:(B, na) f32.  Returns (B, num_heads) f32.
    """
    B, ni = state.shape
    na = action.shape[1]
    width, num_heads = W3.shape
    hidden_dim = width // num_heads
    block_diag_w2 = (W2.shape == (width, width))

    tile = _choose_batch_tile(B)
    grid = (pl.cdiv(B, tile),)            # ragged last block handled by Pallas

    full = lambda shape: pl.BlockSpec(shape, lambda i: (0,) * len(shape))

    kernel = functools.partial(
        _q_heads_kernel, hidden_dim=hidden_dim, num_heads=num_heads,
        block_diag_w2=block_diag_w2)

    return pl.pallas_call(
        kernel,
        out_shape=jax.ShapeDtypeStruct((B, num_heads), jnp.float32),
        grid=grid,
        in_specs=[
            pl.BlockSpec((tile, ni), lambda i: (i, 0)),   # state tile
            pl.BlockSpec((tile, na), lambda i: (i, 0)),   # action tile
            full(W1s.shape),      # (ni, width) layer-1 weights, state rows
            full(W1a.shape),      # (na, width) layer-1 weights, action rows
            full(B1.shape),       # (1, width)
            full(W2.shape),       # (width, width) block-diag OR (width, H)
            full(B2.shape),       # (1, width)
            full(W3.shape),       # (width, num_heads) block matrix
            full(B3.shape),       # (1, num_heads)
        ],
        out_specs=pl.BlockSpec((tile, num_heads), lambda i: (i, 0)),
        compiler_params=pltpu.CompilerParams(
            dimension_semantics=("parallel",)),
    )(state, action, W1s, W1a, B1, W2, B2, W3, B3)


# ----------------------------- QNetwork wrapper ------------------------------

def _linear_init(key, fan_in, fan_out):
    """Deterministic init mimicking PyTorch nn.Linear default (+-1/sqrt(fan_in))."""
    kw, kb = jax.random.split(key)
    bound = 1.0 / jnp.sqrt(jnp.float32(fan_in))
    w = jax.random.uniform(kw, (fan_in, fan_out), jnp.float32, -bound, bound)
    b = jax.random.uniform(kb, (1, fan_out), jnp.float32, -bound, bound)
    return w, b


def init_qnetwork_params(key, num_inputs, num_actions, hidden_dim, double_q=True):
    d_in = num_inputs + num_actions
    keys = jax.random.split(key, 6)

    def head(ks):
        w1, b1 = _linear_init(ks[0], d_in, hidden_dim)
        w2, b2 = _linear_init(ks[1], hidden_dim, hidden_dim)
        w3, b3 = _linear_init(ks[2], hidden_dim, 1)
        return (w1, b1, w2, b2, w3, b3)

    q1 = head(keys[:3])
    q2 = head(keys[3:]) if double_q else None
    return q1, q2


def pack_qnetwork_params(q1_params, q2_params, num_inputs):
    """Pack per-head Linear params into fused kernel weights.  Call ONCE at
    init / param-update time (not per forward call)."""
    heads = (q1_params,) if q2_params is None else (q1_params, q2_params)
    H = q1_params[0].shape[1]
    n = len(heads)
    width = n * H

    W1s = jnp.concatenate([h[0][:num_inputs] for h in heads], axis=1)  # (ni, width)
    W1a = jnp.concatenate([h[0][num_inputs:] for h in heads], axis=1)  # (na, width)
    B1 = jnp.concatenate([h[1] for h in heads], axis=1)                # (1, width)

    if width <= 128:
        # Block-diagonal W2: zeros are free while everything fits one lane tile.
        W2 = jnp.zeros((width, width), jnp.float32)
        for i, h in enumerate(heads):
            W2 = W2.at[i * H:(i + 1) * H, i * H:(i + 1) * H].set(h[2])
    else:
        # Wide heads: stack per-head W2 along rows; kernel uses per-head dots.
        W2 = jnp.concatenate([h[2] for h in heads], axis=0)            # (width, H)
    B2 = jnp.concatenate([h[3] for h in heads], axis=1)                # (1, width)

    # W3 as a (width, n) block matrix: head i's (H,1) weight in column i.
    W3 = jnp.zeros((width, n), jnp.float32)
    for i, h in enumerate(heads):
        W3 = W3.at[i * H:(i + 1) * H, i:i + 1].set(h[4])
    B3 = jnp.concatenate([h[5] for h in heads], axis=1)                # (1, n)

    return (W1s, W1a, B1, W2, B2, W3, B3)


@jax.jit
def qnetwork_forward(state, action, packed):
    """Equivalent of QNetwork.forward for observation_type='vector'.

    `packed` comes from pack_qnetwork_params (done once, outside this jit)."""
    W1s, W1a, B1, W2, B2, W3, B3 = packed
    out = fused_q_forward(state, action, W1s, W1a, B1, W2, B2, W3, B3)
    num_heads = W3.shape[1]                     # static under jit
    if num_heads == 2:
        return out[:, 0:1], out[:, 1:2]
    return out


# Pure-JAX reference for correctness checking.
def _ref_head(x, params):
    w1, b1, w2, b2, w3, b3 = params
    h = jnp.maximum(x @ w1 + b1, 0.0)
    h = jnp.maximum(h @ w2 + b2, 0.0)
    return h @ w3 + b3


if __name__ == "__main__":
    # Small shapes consistent with the module: vector obs, doubleQ=True.
    batch = 8
    num_inputs = 24
    num_actions = 8
    hidden_dim = 32

    key = jax.random.PRNGKey(0)
    k_state, k_action, k_params = jax.random.split(key, 3)

    state = jax.random.normal(k_state, (batch, num_inputs), jnp.float32)
    action = jax.random.normal(k_action, (batch, num_actions), jnp.float32)

    q1_params, q2_params = init_qnetwork_params(
        k_params, num_inputs, num_actions, hidden_dim, double_q=True)
    packed = pack_qnetwork_params(q1_params, q2_params, num_inputs)  # once

    q1, q2 = qnetwork_forward(state, action, packed)
    jax.block_until_ready((q1, q2))

    # Sanity check against a plain-JAX reference of the same math.
    x = jnp.concatenate([state, action], axis=-1)
    ref1 = _ref_head(x, q1_params)
    ref2 = _ref_head(x, q2_params)
    assert q1.shape == (batch, 1) and q2.shape == (batch, 1)
    assert jnp.allclose(q1, ref1, atol=1e-5, rtol=1e-5)
    assert jnp.allclose(q2, ref2, atol=1e-5, rtol=1e-5)

    # Also exercise a non-multiple batch to cover the Pallas-handled ragged
    # last block (no wrapper-side pad / slice).
    b2_ = 13
    s2 = jax.random.normal(jax.random.PRNGKey(1), (b2_, num_inputs), jnp.float32)
    a2 = jax.random.normal(jax.random.PRNGKey(2), (b2_, num_actions), jnp.float32)
    r1, r2 = qnetwork_forward(s2, a2, packed)
    jax.block_until_ready((r1, r2))
    x2 = jnp.concatenate([s2, a2], axis=-1)
    assert jnp.allclose(r1, _ref_head(x2, q1_params), atol=1e-5, rtol=1e-5)
    assert jnp.allclose(r2, _ref_head(x2, q2_params), atol=1e-5, rtol=1e-5)

    # TODO(synk): 'box' observation type (Conv2d encoder) not implemented; this
    # script covers the 'vector' branch of QNetwork.forward.
    print("KERNEL_OK")
</pallas_src>

<mosaic_0001>
module attributes {stable_mosaic.version = 11 : i64} {
  func.func @_q_heads_kernel(%arg0: i32, %arg1: memref<8x24xf32, #tpu.memory_space<vmem>>, %arg2: memref<8x8xf32, #tpu.memory_space<vmem>>, %arg3: memref<24x64xf32, #tpu.memory_space<vmem>>, %arg4: memref<8x64xf32, #tpu.memory_space<vmem>>, %arg5: memref<1x64xf32, #tpu.memory_space<vmem>>, %arg6: memref<64x64xf32, #tpu.memory_space<vmem>>, %arg7: memref<1x64xf32, #tpu.memory_space<vmem>>, %arg8: memref<64x2xf32, #tpu.memory_space<vmem>>, %arg9: memref<1x2xf32, #tpu.memory_space<vmem>>, %arg10: memref<8x2xf32, #tpu.memory_space<vmem>>) attributes {dimension_semantics = [#tpu.dimension_semantics<parallel>], iteration_bounds = array<i64: 1>, scalar_prefetch = 0 : i64, scratch_operands = 0 : i64, tpu.core_type = #tpu.core_type<tc>, window_params = [{transform_indices = @transform_0, window_bounds = array<i64: 8, 24>}, {transform_indices = @transform_1, window_bounds = array<i64: 8, 8>}, {pipeline_mode = #tpu.pipeline_mode<synchronous>, transform_indices = @transform_2, window_bounds = array<i64: 24, 64>}, {pipeline_mode = #tpu.pipeline_mode<synchronous>, transform_indices = @transform_3, window_bounds = array<i64: 8, 64>}, {pipeline_mode = #tpu.pipeline_mode<synchronous>, transform_indices = @transform_4, window_bounds = array<i64: 1, 64>}, {pipeline_mode = #tpu.pipeline_mode<synchronous>, transform_indices = @transform_5, window_bounds = array<i64: 64, 64>}, {pipeline_mode = #tpu.pipeline_mode<synchronous>, transform_indices = @transform_6, window_bounds = array<i64: 1, 64>}, {pipeline_mode = #tpu.pipeline_mode<synchronous>, transform_indices = @transform_7, window_bounds = array<i64: 64, 2>}, {pipeline_mode = #tpu.pipeline_mode<synchronous>, transform_indices = @transform_8, window_bounds = array<i64: 1, 2>}, {transform_indices = @transform_9, window_bounds = array<i64: 8, 2>}]} {
    %c0 = arith.constant 0 : index
    %c0_0 = arith.constant 0 : index
    %0 = vector.load %arg1[%c0, %c0_0] : memref<8x24xf32, #tpu.memory_space<vmem>>, vector<8x24xf32>
    %c0_1 = arith.constant 0 : index
    %c0_2 = arith.constant 0 : index
    %1 = vector.load %arg3[%c0_1, %c0_2] : memref<24x64xf32, #tpu.memory_space<vmem>>, vector<24x64xf32>
    %cst = arith.constant dense<0.000000e+00> : vector<8x64xf32>
    %2 = tpu.matmul %0, %1, %cst {dimension_numbers = #tpu.dot_dimension_numbers<[1], [0], [0], [1], [0, 0, 1, 1], [], []>} : vector<8x24xf32>, vector<24x64xf32>, vector<8x64xf32> -> vector<8x64xf32>
    %c0_3 = arith.constant 0 : index
    %c0_4 = arith.constant 0 : index
    %3 = vector.load %arg2[%c0_3, %c0_4] : memref<8x8xf32, #tpu.memory_space<vmem>>, vector<8x8xf32>
    %c0_5 = arith.constant 0 : index
    %c0_6 = arith.constant 0 : index
    %4 = vector.load %arg4[%c0_5, %c0_6] : memref<8x64xf32, #tpu.memory_space<vmem>>, vector<8x64xf32>
    %cst_7 = arith.constant dense<0.000000e+00> : vector<8x64xf32>
    %5 = tpu.matmul %3, %4, %cst_7 {dimension_numbers = #tpu.dot_dimension_numbers<[1], [0], [0], [1], [0, 0, 1, 1], [], []>} : vector<8x8xf32>, vector<8x64xf32>, vector<8x64xf32> -> vector<8x64xf32>
    %6 = arith.addf %2, %5 : vector<8x64xf32>
    %c0_8 = arith.constant 0 : index
    %c0_9 = arith.constant 0 : index
    %7 = vector.load %arg5[%c0_8, %c0_9] : memref<1x64xf32, #tpu.memory_space<vmem>>, vector<1x64xf32>
    %8 = vector.broadcast %7 : vector<1x64xf32> to vector<8x64xf32>
    %9 = arith.addf %6, %8 : vector<8x64xf32>
    %cst_10 = arith.constant 0.000000e+00 : f32
    %10 = vector.broadcast %cst_10 : f32 to vector<8x64xf32>
    %11 = arith.maximumf %9, %10 : vector<8x64xf32>
    %c0_11 = arith.constant 0 : index
    %c0_12 = arith.constant 0 : index
    %12 = vector.load %arg6[%c0_11, %c0_12] : memref<64x64xf32, #tpu.memory_space<vmem>>, vector<64x64xf32>
    %cst_13 = arith.constant dense<0.000000e+00> : vector<8x64xf32>
    %13 = tpu.matmul %11, %12, %cst_13 {dimension_numbers = #tpu.dot_dimension_numbers<[1], [0], [0], [1], [0, 0, 1, 1], [], []>} : vector<8x64xf32>, vector<64x64xf32>, vector<8x64xf32> -> vector<8x64xf32>
    %c0_14 = arith.constant 0 : index
    %c0_15 = arith.constant 0 : index
    %14 = vector.load %arg7[%c0_14, %c0_15] : memref<1x64xf32, #tpu.memory_space<vmem>>, vector<1x64xf32>
    %15 = vector.broadcast %14 : vector<1x64xf32> to vector<8x64xf32>
    %16 = arith.addf %13, %15 : vector<8x64xf32>
    %cst_16 = arith.constant 0.000000e+00 : f32
    %17 = vector.broadcast %cst_16 : f32 to vector<8x64xf32>
    %18 = arith.maximumf %16, %17 : vector<8x64xf32>
    %c0_17 = arith.constant 0 : index
    %c0_18 = arith.constant 0 : index
    %19 = vector.load %arg8[%c0_17, %c0_18] : memref<64x2xf32, #tpu.memory_space<vmem>>, vector<64x2xf32>
    %cst_19 = arith.constant dense<0.000000e+00> : vector<8x2xf32>
    %20 = tpu.matmul %18, %19, %cst_19 {dimension_numbers = #tpu.dot_dimension_numbers<[1], [0], [0], [1], [0, 0, 1, 1], [], []>} : vector<8x64xf32>, vector<64x2xf32>, vector<8x2xf32> -> vector<8x2xf32>
    %c0_20 = arith.constant 0 : index
    %c0_21 = arith.constant 0 : index
    %21 = vector.load %arg9[%c0_20, %c0_21] : memref<1x2xf32, #tpu.memory_space<vmem>>, vector<1x2xf32>
    %22 = vector.broadcast %21 : vector<1x2xf32> to vector<8x2xf32>
    %23 = arith.addf %20, %22 : vector<8x2xf32>
    %c0_22 = arith.constant 0 : index
    %c0_23 = arith.constant 0 : index
    %24 = vector.load %arg10[%c0_22, %c0_23] : memref<8x2xf32, #tpu.memory_space<vmem>>, vector<8x2xf32>
    tpu.vector_store %arg10[%c0_22, %c0_23], %23 {strides = array<i32>} : memref<8x2xf32, #tpu.memory_space<vmem>>, vector<8x2xf32>,
    return
  }
  func.func @transform_0(%arg0: i32) -> (i32, i32) {
    %c0_i32 = arith.constant 0 : i32
    %c0_i32_0 = arith.constant 0 : i32
    return %arg0, %c0_i32 : i32, i32
  }
  func.func @transform_1(%arg0: i32) -> (i32, i32) {
    %c0_i32 = arith.constant 0 : i32
    %c0_i32_0 = arith.constant 0 : i32
    return %arg0, %c0_i32 : i32, i32
  }
  func.func @transform_2(%arg0: i32) -> (i32, i32) {
    %c0_i32 = arith.constant 0 : i32
    %c0_i32_0 = arith.constant 0 : i32
    %c0_i32_1 = arith.constant 0 : i32
    return %c0_i32, %c0_i32_0 : i32, i32
  }
  func.func @transform_3(%arg0: i32) -> (i32, i32) {
    %c0_i32 = arith.constant 0 : i32
    %c0_i32_0 = arith.constant 0 : i32
    %c0_i32_1 = arith.constant 0 : i32
    return %c0_i32, %c0_i32_0 : i32, i32
  }
  func.func @transform_4(%arg0: i32) -> (i32, i32) {
    %c0_i32 = arith.constant 0 : i32
    %c0_i32_0 = arith.constant 0 : i32
    %c0_i32_1 = arith.constant 0 : i32
    return %c0_i32, %c0_i32_0 : i32, i32
  }
  func.func @transform_5(%arg0: i32) -> (i32, i32) {
    %c0_i32 = arith.constant 0 : i32
    %c0_i32_0 = arith.constant 0 : i32
    %c0_i32_1 = arith.constant 0 : i32
    return %c0_i32, %c0_i32_0 : i32, i32
  }
  func.func @transform_6(%arg0: i32) -> (i32, i32) {
    %c0_i32 = arith.constant 0 : i32
    %c0_i32_0 = arith.constant 0 : i32
    %c0_i32_1 = arith.constant 0 : i32
    return %c0_i32, %c0_i32_0 : i32, i32
  }
  func.func @transform_7(%arg0: i32) -> (i32, i32) {
    %c0_i32 = arith.constant 0 : i32
    %c0_i32_0 = arith.constant 0 : i32
    %c0_i32_1 = arith.constant 0 : i32
    return %c0_i32, %c0_i32_0 : i32, i32
  }
  func.func @transform_8(%arg0: i32) -> (i32, i32) {
    %c0_i32 = arith.constant 0 : i32
    %c0_i32_0 = arith.constant 0 : i32
    %c0_i32_1 = arith.constant 0 : i32
    return %c0_i32, %c0_i32_0 : i32, i32
  }
  func.func @transform_9(%arg0: i32) -> (i32, i32) {
    %c0_i32 = arith.constant 0 : i32
    %c0_i32_0 = arith.constant 0 : i32
    return %arg0, %c0_i32 : i32, i32
  }
}

</mosaic_0001>

<bundles_post_ra>
// kernel: qnetwork_forward.1
= control target key start
LH: loop header
LB: loop body
LE: loop exit
PB: predicated region body
PF: predicated region fallthrough
CT: control target
= control target key end

     0   :  { %14 = vsyncpa [#allocation3], 0  ;;  %s723_s0 = inlined_call_operand.vmem [shape: f32[8,24], index: 0, kind: input, shape index: {}]   ;;  %s724_s1 = inlined_call_operand.vmem [shape: f32[8,8], index: 1, kind: input, shape index: {}]   ;;  %s725_s2 = inlined_call_operand.hbm [shape: f32[24,64], index: 2, kind: input, shape index: {}]   ;;  %s726_s3 = inlined_call_operand.hbm [shape: f32[8,64], index: 3, kind: input, shape index: {}]   ;;  %s727_s4 = inlined_call_operand.vmem [shape: f32[1,64], index: 4, kind: input, shape index: {}]   ;;  %s728_s5 = inlined_call_operand.vmem [shape: f32[64,64], index: 5, kind: input, shape index: {}]   ;;  %s729_s6 = inlined_call_operand.vmem [shape: f32[1,64], index: 6, kind: input, shape index: {}]   ;;  %s730_s7 = inlined_call_operand.vmem [shape: f32[64,2], index: 7, kind: input, shape index: {}]   ;;  %s731_s8 = inlined_call_operand.vmem [shape: f32[1,2], index: 8, kind: input, shape index: {}]   ;;  %s732_s9 = inlined_call_operand.vmem [shape: f32[8,2], index: 9, kind: output, shape index: {}]  }
   0x1   :  { %15 = vsyncpa [#allocation5], 0  ;;  %s572_s30 = smov [#allocation2]   ;;  %s524_s13 = scalar_lea.hbm %s725_s2, 384 }
   0x2   :  { %s25_s10 = sshll.u32 %s572_s30, 4  ;;  %p525_p0 = scmp.ne.s32.totalorder %s725_s2, %s524_s13  ;;  %s26_s10 = int_to_ptr.vmem [resolvable:$true] %s25_s10 }
   0x3   :  { %p528_p1 = scmp.lt.u32.totalorder %s524_s13, %s725_s2 }
   0x5   :  { %p530_p2 = pnand %p528_p1, %p525_p0 }
   0x7   :  { %533 = shalt.err (!%p530_p2)
}
   0x8   :  { %s534_s18 = scalar_lea.vmem %s26_s10, 384  ;;  %p539_p4 = scmp.lt.s32.totalorder %s26_s10, %s26_s10 }
   0x9   :  { %p535_p3 = scmp.ne.s32.totalorder %s26_s10, %s534_s18  ;;  %p540_p5 = scmp.lt.s32.totalorder %s534_s18, %s534_s18 }
   0xb   :  { %p541_p6 = por %p540_p5, %p539_p4 }
   0xd   :  { %p542_p7 = pnand %p541_p6, %p535_p3 }
   0xf   :  { %545 = shalt.err (!%p542_p7)
}
  0x10   :  { %s573_s19 = smov 128   ;;  %s574_s20 = smov 8  }
  0x11   :  { %31 = dma.hbm_to_vmem [thread:$0]  %s725_s2, 384, %s26_s10, [#allocation3], %s573_s19, %s573_s19, %s574_s20  }
  0x12   :  { %s575_s23 = smov [#allocation4]   ;;  %s546_s27 = scalar_lea.hbm %s726_s3, 128 }
  0x13   :  { %s38_s24 = sshll.u32 %s575_s23, 4  ;;  %p547_p8 = scmp.ne.s32.totalorder %s726_s3, %s546_s27  ;;  %s39_s24 = int_to_ptr.vmem [resolvable:$true] %s38_s24 }
  0x14   :  { %p550_p9 = scmp.lt.u32.totalorder %s546_s27, %s726_s3 }
  0x16   :  { %p552_p10 = pnand %p550_p9, %p547_p8 }
  0x18   :  { %555 = shalt.err (!%p552_p10)
}
  0x19   :  { %s556_s12 = scalar_lea.vmem %s39_s24, 128  ;;  %p561_p12 = scmp.lt.s32.totalorder %s39_s24, %s39_s24 }
  0x1a   :  { %p557_p11 = scmp.ne.s32.totalorder %s39_s24, %s556_s12  ;;  %p562_p13 = scmp.lt.s32.totalorder %s556_s12, %s556_s12 }
  0x1c   :  { %p563_p0 = por %p562_p13, %p561_p12 }
  0x1e   :  { %p564_p1 = pnand %p563_p0, %p557_p11 }
  0x20   :  { %567 = shalt.err (!%p564_p1)
}
  0x21   :  { %41 = dma.hbm_to_vmem [thread:$0]  %s726_s3, 128, %s39_s24, [#allocation5]  }
  0x22   :  { %568 = dma.done.wait [#allocation3], 384  }
  0x23   :  { %569 = vsyncadd [#allocation3], 4294966912 }
  0x24   :  { %570 = dma.done.wait [#allocation5], 128  }
  0x25   :  { %571 = vsyncadd [#allocation5], 4294967168  ;;  %v576_v0 = vmov 0.0|0.0   ;;  %v577_v1 = vmov 0.0   ;;  %vm578_vm0 = vmmov 0   ;;  %vm64_vm1 = vcmask 64512  }
  0x26   :  { %490 = vmatprep.subr.bf16.mxu1 %v576_v0  ;;  %438 = vmatprep.subr.mxu0 %v577_v1  ;;  %v59_v2 = vld [vmem:[#allocation2] sm:$0xff]  ;;  %v60_v3 = vld [vmem:[#allocation2 + $0x8] sm:$0xff]  ;;  %v63_v4 = vld [vmem:[#allocation4] sm:$0xff]  ;;  %vm138_vm2 = vcmask 195584   ;;  %vm236_vm3 = vcmask 523264   ;;  %vm399_vm4 = vcmask 15360  }
  0x27   :  { %440 = vmatprep.mubr.msk.f32.mxu0 %vm578_vm0, %v577_v1  ;;  %449 = vmatprep.mubr.msk.f32.mxu1 %vm578_vm0, %v577_v1  ;;  %v491_v5 = vpack.c.bf16 %v60_v3, %v59_v2  ;;  %v62_v6 = vld [vmem:[%s724_s1] sm:$0xff]  ;;  %v222_v8 = vld [vmem:[%s728_s5 + $0x8] sm:$0xff]  ;;  %v223_v9 = vld [vmem:[%s728_s5 + $0x10] sm:$0xff] }
  0x28   :  { %439 = vmatpush3.msra.mxu0 %v63_v4  ;;  %v221_v7 = vld [vmem:[%s728_s5] sm:$0xff]  ;;  %v224_v11 = vld [vmem:[%s728_s5 + $0x18] sm:$0xff]  ;;  %v61_v12 = vld [vmem:[#allocation2 + $0x10] sm:$0xff] }
  0x29   :  { %441 = vmatmul.mubr.msk.f32.vlgmr.msra.gmra.mrb[0].mxu0 %vm64_vm1, %v62_v6  ;;  %493 = vmatprep.subr.bf16.mxu0 %v576_v0  ;;  %v494_v10 = vpack.c.bf16 %v222_v8, %v221_v7  ;;  %v58_v13 = vld [vmem:[%s723_s0] sm:$0xff]  ;;  %v497_v14 = vpack.c.bf16 %v224_v11, %v223_v9  ;;  %v226_v16 = vld [vmem:[%s728_s5 + $0x28] sm:$0xff]  ;;  %v227_v18 = vld [vmem:[%s728_s5 + $0x30] sm:$0xff] }
  0x2a   :  { %492 = vmatpush3.bf16.msra.mxu1 %v491_v5  ;;  %468 = vmatprep.mubr.msk.f32.mxu0 %vm578_vm0, %v577_v1  ;;  %v225_v15 = vld [vmem:[%s728_s5 + $0x20] sm:$0xff]  ;;  %v228_v19 = vld [vmem:[%s728_s5 + $0x38] sm:$0xff]  ;;  %v312_v22 = vld [vmem:[%s730_s7 + $0x8] sm:$0xff] }
  0x2b   :  { %447 = vmatprep.subr.mxu1 %v577_v1  ;;  %495 = vmatpush3.bf16.msra.mxu0 %v494_v10  ;;  %v500_v17 = vpack.c.bf16 %v226_v16, %v225_v15  ;;  %v503_v20 = vpack.c.bf16 %v228_v19, %v227_v18  ;;  %v311_v21 = vld [vmem:[%s730_s7] sm:$0xff]  ;;  %v313_v23 = vld [vmem:[%s730_s7 + $0x10] sm:$0xff]  ;;  %v314_v25 = vld [vmem:[%s730_s7 + $0x18] sm:$0xff] }
  0x2c   :  { %496 = vmatprep.subr.bf16.mxu0 %v576_v0  ;;  %v506_v24 = vpack.c.bf16 %v312_v22, %v311_v21  ;;  %v509_v26 = vpack.c.bf16 %v314_v25, %v313_v23  ;;  %v315_v27 = vld [vmem:[%s730_s7 + $0x20] sm:$0xff]  ;;  %v316_v28 = vld [vmem:[%s730_s7 + $0x28] sm:$0xff]  ;;  %v317_v38 = vld [vmem:[%s730_s7 + $0x30] sm:$0xff] }
  0x2d   :  { %v512_v29 = vpack.c.bf16 %v316_v28, %v315_v27  ;;  %v409_v33 = vld [vmem:[%s727_s4] ss:$0 sm:$0xff]  ;;  %v318_v39 = vld [vmem:[%s730_s7 + $0x38] sm:$0xff] }
  0x2e   :  { %448 = vmatpush3.msra.mxu1 %v61_v12  ;;  %v515_v40 = vpack.c.bf16 %v318_v39, %v317_v38  ;;  %v410_v41 = vld [vmem:[%s729_s6] ss:$0 sm:$0xff] }
  0x2f   :  { %450 = vmatmul.mubr.msk.f32.vlgmr.msra.gmra.mrb[0].mxu1 %vm138_vm2, %v58_v13  ;;  %505 = vmatprep.subr.bf16.mxu1 %v576_v0  ;;  %v412_v46 = vld [vmem:[%s731_s8] ss:$0 sm:$0xff] }
  0x30   :  { %498 = vmatpush3.bf16.msra.mxu0 %v497_v14  ;;  %487 = vmatprep.mubr.msk.f32.mxu1 %vm578_vm0, %v577_v1 }
  0x31   :  { %499 = vmatprep.subr.bf16.mxu0 %v576_v0  ;;  %507 = vmatpush3.bf16.msra.mxu1 %v506_v24 }
  0x32   :  { %508 = vmatprep.subr.bf16.mxu1 %v576_v0 }
  0x34   :  { %501 = vmatpush3.bf16.msra.mxu0 %v500_v17 }
  0x35   :  { %502 = vmatprep.subr.bf16.mxu0 %v576_v0  ;;  %510 = vmatpush3.bf16.msra.mxu1 %v509_v26 }
  0x36   :  { %511 = vmatprep.subr.bf16.mxu1 %v576_v0 }
  0x38   :  { %504 = vmatpush3.bf16.msra.mxu0 %v503_v20 }
  0x39   :  { %513 = vmatpush3.bf16.msra.mxu1 %v512_v29 }
  0x3a   :  { %514 = vmatprep.subr.bf16.mxu1 %v576_v0 }
  0x3d   :  { %516 = vmatpush3.bf16.msra.mxu1 %v515_v40 }
  0xfc   :  { %v134_v30 = vpop.f32.mrb[0].mxu0 }
  0xfd   :  { %v442_v31 = vpop.f32.mrb[1].mxu0 }
 0x102   :  { %v208_v32 = vpop.f32.mrb[0].mxu1 }
 0x103   :  { %v209_v34 = vadd.f32 %v208_v32, %v134_v30  ;;  %v451_v35 = vpop.f32.mrb[1].mxu1 }
 0x105   :  { %v219_v36 = vadd.f32 %v409_v33, %v209_v34 }
 0x107   :  { %v220_v37 = vmax.f32 %v219_v36, 0.0 }
 0x109   :  { %469 = vmatmul.mubr.msk.f32.vlgmr.msra.gmra.mrb[2].mxu0 %vm236_vm3, %v220_v37 }
 0x1dc   :  { %v306_v42 = vpop.f32.mrb[2].mxu0 }
 0x1dd   :  { %v307_v43 = vadd.f32 %v410_v41, %v306_v42  ;;  %v470_v44 = vpop.f32.mrb[3].mxu0 }
 0x1df   :  { %v310_v45 = vmax.f32 %v307_v43, 0.0 }
 0x1e1   :  { %488 = vmatmul.mubr.msk.f32.vlgmr.msra.gmra.mrb[2].mxu1 %vm236_vm3, %v310_v45 }
 0x2b4   :  { %v395_v47 = vpop.f32.mrb[2].mxu1 }
 0x2b5   :  { %v396_v48 = vadd.f32 %v412_v46, %v395_v47  ;;  %v489_v49 = vpop.f32.mrb[3].mxu1 }
 0x2b7   :  { %400 = vst.msk [vmem:[%s732_s9] sm:$0xff] %vm399_vm4, %v396_v48 }
 0x2b8   :  { %405 = vsyncpa [#allocation3], 1 }
 0x2b9   :  { %406 = vsyncpa [#allocation5], 1 }

</bundles_post_ra>
